<compile_context>
chip_gen: v7x
topology: tpu7x:2x2x1
jax: 0.10.0
libtpu: 0.0.40
codegen_flags: <defaults>
</compile_context>

<pallas_src>
import jax
import jax.numpy as jnp
from jax.experimental import pallas as pl
from jax.experimental.pallas import tpu as pltpu


def _relu6(x):
    return jnp.clip(x, 0.0, 6.0)


def loss_branch_kernel(
    x_ref,            # (Cin, T)       f32, pixels on lanes
    w1_ref, b1_ref,   # (Cmid, Cin)    bf16, (Cmid, 1) f32
    w2_ref, b2_ref,   # (2*Cmid, Cmid) bf16, (2*Cmid, 1) f32   [w2_score ; w2_bbox]
    w3_ref, b3_ref,   # (8, 2*Cmid)    bf16, (8, 1) f32        block-diag [classify | regress]
    cls_ref,          # (2, T) f32
    reg_ref,          # (4, T) f32
):
    mm_dtype = w1_ref.dtype
    x = x_ref[...].astype(mm_dtype)

    # conv1: 1x1 conv + ReLU6   -> (Cmid, T)
    h = _relu6(
        jnp.dot(w1_ref[...], x, preferred_element_type=jnp.float32) + b1_ref[...]
    )

    # fused conv2_score / conv2_bbox: one matmul -> (2*Cmid, T) = [hs ; hb]
    h2 = _relu6(
        jnp.dot(w2_ref[...], h.astype(mm_dtype), preferred_element_type=jnp.float32)
        + b2_ref[...]
    )

    # fused classify / regress via block-diagonal weight -> (8, T)
    # rows 0:2 = classify(hs), rows 2:6 = regress(hb), rows 6:8 = zero padding
    out = (
        jnp.dot(w3_ref[...], h2.astype(mm_dtype), preferred_element_type=jnp.float32)
        + b3_ref[...]
    )

    cls_ref[...] = out[0:2, :].astype(cls_ref.dtype)
    reg_ref[...] = out[2:6, :].astype(reg_ref.dtype)


def _pack_params(params, compute_dtype):
    """Pack the 5 conv layers into 3 fused weight/bias pairs."""
    cmid = params["w1"].shape[0]

    w1 = params["w1"].astype(compute_dtype)                        # (Cmid, Cin)
    b1 = params["b1"].reshape(cmid, 1).astype(jnp.float32)

    w2 = jnp.concatenate([params["w2s"], params["w2b"]], axis=0)   # (2*Cmid, Cmid)
    w2 = w2.astype(compute_dtype)
    b2 = jnp.concatenate([params["b2s"], params["b2b"]], axis=0)
    b2 = b2.reshape(2 * cmid, 1).astype(jnp.float32)

    w3 = jnp.zeros((8, 2 * cmid), dtype=jnp.float32)
    w3 = w3.at[0:2, 0:cmid].set(params["wc"])
    w3 = w3.at[2:6, cmid:2 * cmid].set(params["wr"])
    w3 = w3.astype(compute_dtype)
    b3 = jnp.zeros((8, 1), dtype=jnp.float32)
    b3 = b3.at[0:2, 0].set(params["bc"])
    b3 = b3.at[2:6, 0].set(params["br"])

    return w1, b1, w2, b2, w3, b3


def loss_branch_forward(x_nchw, params, *, tile_hw=1024,
                        compute_dtype=jnp.bfloat16):
    """x_nchw: (N, Cin, H, W) float32.  Returns (cls, reg) in NCHW."""
    N, Cin, H, W = x_nchw.shape
    cmid = params["w1"].shape[0]
    HW = H * W

    # Lane tile: multiple of 128, no larger than the (128-rounded) spatial size.
    tile_hw = max(128, min(tile_hw, pl.cdiv(HW, 128) * 128))
    hw_pad = pl.cdiv(HW, tile_hw) * tile_hw

    # NCHW -> (N, Cin, H*W); pad spatial axis (padded pixels are sliced off).
    x_flat = x_nchw.reshape(N, Cin, HW)
    if hw_pad != HW:
        x_flat = jnp.pad(x_flat, ((0, 0), (0, 0), (0, hw_pad - HW)))

    w1, b1, w2, b2, w3, b3 = _pack_params(params, compute_dtype)

    grid = (N, hw_pad // tile_hw)

    def weight_spec(shape):
        return pl.BlockSpec(shape, lambda n, t: (0, 0))

    cls_flat, reg_flat = pl.pallas_call(
        loss_branch_kernel,
        out_shape=(
            jax.ShapeDtypeStruct((N, 2, hw_pad), jnp.float32),
            jax.ShapeDtypeStruct((N, 4, hw_pad), jnp.float32),
        ),
        grid_spec=pltpu.PrefetchScalarGridSpec(
            num_scalar_prefetch=0,
            grid=grid,
            in_specs=[
                pl.BlockSpec((None, Cin, tile_hw), lambda n, t: (n, 0, t)),
                weight_spec((cmid, Cin)), weight_spec((cmid, 1)),
                weight_spec((2 * cmid, cmid)), weight_spec((2 * cmid, 1)),
                weight_spec((8, 2 * cmid)), weight_spec((8, 1)),
            ],
            out_specs=(
                pl.BlockSpec((None, 2, tile_hw), lambda n, t: (n, 0, t)),
                pl.BlockSpec((None, 4, tile_hw), lambda n, t: (n, 0, t)),
            ),
        ),
        compiler_params=pltpu.CompilerParams(
            dimension_semantics=("parallel", "parallel"),
        ),
    )(x_flat, w1, b1, w2, b2, w3, b3)

    # Already channel-major: just drop padding and reshape back to NCHW.
    cls = cls_flat[:, :, :HW].reshape(N, 2, H, W)
    reg = reg_flat[:, :, :HW].reshape(N, 4, H, W)
    return cls, reg


def init_params(key, in_channels, mid_channels=64):
    """Deterministic synthetic parameters, PyTorch Conv2d layout (out, in)."""
    ks = jax.random.split(key, 10)

    def w(k, cout, cin, scale=0.1):
        return (scale * jax.random.normal(k, (cout, cin))).astype(jnp.float32)

    def b(k, cout, scale=0.05):
        return (scale * jax.random.normal(k, (cout,))).astype(jnp.float32)

    return {
        "w1": w(ks[0], mid_channels, in_channels), "b1": b(ks[1], mid_channels),
        "w2s": w(ks[2], mid_channels, mid_channels), "b2s": b(ks[3], mid_channels),
        "wc": w(ks[4], 2, mid_channels), "bc": b(ks[5], 2),
        "w2b": w(ks[6], mid_channels, mid_channels), "b2b": b(ks[7], mid_channels),
        "wr": w(ks[8], 4, mid_channels), "br": b(ks[9], 4),
    }


def _reference_forward(x_nchw, params):
    """Plain-JAX f32 reference matching the PyTorch module semantics."""
    def conv1x1(x, w, b):  # x: (N, Cin, H, W), w: (Cout, Cin), b: (Cout,)
        return jnp.einsum("oc,nchw->nohw", w, x) + b[None, :, None, None]

    relu6 = lambda v: jnp.clip(v, 0.0, 6.0)
    h = relu6(conv1x1(x_nchw, params["w1"], params["b1"]))
    hs = relu6(conv1x1(h, params["w2s"], params["b2s"]))
    cls = conv1x1(hs, params["wc"], params["bc"])
    hb = relu6(conv1x1(h, params["w2b"], params["b2b"]))
    reg = conv1x1(hb, params["wr"], params["br"])
    return cls, reg


def _check(x, params, **kw):
    cls, reg = loss_branch_forward(x, params, **kw)
    cls = jax.block_until_ready(cls)
    reg = jax.block_until_ready(reg)
    cls_ref, reg_ref = _reference_forward(x, params)
    assert cls.shape == cls_ref.shape and reg.shape == reg_ref.shape
    # bf16 matmuls with f32 accumulation: loose-but-meaningful tolerance.
    assert jnp.allclose(cls, cls_ref, atol=5e-2, rtol=5e-2)
    assert jnp.allclose(reg, reg_ref, atol=5e-2, rtol=5e-2)


if __name__ == "__main__":
    key = jax.random.PRNGKey(0)
    kx1, kx2, kp = jax.random.split(key, 3)

    N, Cin, mid_channels = 2, 4, 64
    params = init_params(kp, Cin, mid_channels)

    # Case 1: HW divisible by the tile, multi-tile spatial grid (2, 2).
    x1 = jax.random.normal(kx1, (N, Cin, 32, 32), dtype=jnp.float32)
    _check(x1, params, tile_hw=512)

    # Case 2: ragged spatial size (20*20 = 400) exercising the padding path.
    x2 = jax.random.normal(kx2, (N, Cin, 20, 20), dtype=jnp.float32)
    _check(x2, params)

    print("KERNEL_OK")
</pallas_src>

<mosaic_0001>
module attributes {stable_mosaic.version = 11 : i64} {
  func.func @loss_branch_kernel(%arg0: i32, %arg1: i32, %arg2: memref<1x4x512xf32, #tpu.memory_space<vmem>>, %arg3: memref<64x4xbf16, #tpu.memory_space<vmem>>, %arg4: memref<64x1xf32, #tpu.memory_space<vmem>>, %arg5: memref<128x64xbf16, #tpu.memory_space<vmem>>, %arg6: memref<128x1xf32, #tpu.memory_space<vmem>>, %arg7: memref<8x128xbf16, #tpu.memory_space<vmem>>, %arg8: memref<8x1xf32, #tpu.memory_space<vmem>>, %arg9: memref<1x2x512xf32, #tpu.memory_space<vmem>>, %arg10: memref<1x4x512xf32, #tpu.memory_space<vmem>>) attributes {dimension_semantics = [#tpu.dimension_semantics<parallel>, #tpu.dimension_semantics<parallel>], iteration_bounds = array<i64: 2, 2>, scalar_prefetch = 0 : i64, scratch_operands = 0 : i64, tpu.core_type = #tpu.core_type<tc>, window_params = [{transform_indices = @transform_0, window_bounds = array<i64: 1, 4, 512>}, {pipeline_mode = #tpu.pipeline_mode<synchronous>, transform_indices = @transform_1, window_bounds = array<i64: 64, 4>}, {pipeline_mode = #tpu.pipeline_mode<synchronous>, transform_indices = @transform_2, window_bounds = array<i64: 64, 1>}, {pipeline_mode = #tpu.pipeline_mode<synchronous>, transform_indices = @transform_3, window_bounds = array<i64: 128, 64>}, {pipeline_mode = #tpu.pipeline_mode<synchronous>, transform_indices = @transform_4, window_bounds = array<i64: 128, 1>}, {pipeline_mode = #tpu.pipeline_mode<synchronous>, transform_indices = @transform_5, window_bounds = array<i64: 8, 128>}, {pipeline_mode = #tpu.pipeline_mode<synchronous>, transform_indices = @transform_6, window_bounds = array<i64: 8, 1>}, {transform_indices = @transform_7, window_bounds = array<i64: 1, 2, 512>}, {transform_indices = @transform_8, window_bounds = array<i64: 1, 4, 512>}]} {
    %c0 = arith.constant 0 : index
    %c0_0 = arith.constant 0 : index
    %c0_1 = arith.constant 0 : index
    %0 = vector.load %arg2[%c0, %c0_0, %c0_1] : memref<1x4x512xf32, #tpu.memory_space<vmem>>, vector<1x4x512xf32>
    %1 = vector.shape_cast %0 : vector<1x4x512xf32> to vector<4x512xf32>
    %2 = arith.truncf %1 : vector<4x512xf32> to vector<4x512xbf16>
    %c0_2 = arith.constant 0 : index
    %c0_3 = arith.constant 0 : index
    %3 = vector.load %arg3[%c0_2, %c0_3] : memref<64x4xbf16, #tpu.memory_space<vmem>>, vector<64x4xbf16>
    %cst = arith.constant dense<0.000000e+00> : vector<64x512xf32>
    %4 = tpu.matmul %3, %2, %cst {dimension_numbers = #tpu.dot_dimension_numbers<[1], [0], [0], [1], [0, 0, 1, 1], [], []>} : vector<64x4xbf16>, vector<4x512xbf16>, vector<64x512xf32> -> vector<64x512xf32>
    %c0_4 = arith.constant 0 : index
    %c0_5 = arith.constant 0 : index
    %5 = vector.load %arg4[%c0_4, %c0_5] : memref<64x1xf32, #tpu.memory_space<vmem>>, vector<64x1xf32>
    %6 = vector.broadcast %5 : vector<64x1xf32> to vector<64x512xf32>
    %7 = arith.addf %4, %6 : vector<64x512xf32>
    %cst_6 = arith.constant 0.000000e+00 : f32
    %cst_7 = arith.constant 6.000000e+00 : f32
    %8 = vector.broadcast %cst_6 : f32 to vector<64x512xf32>
    %9 = arith.maximumf %8, %7 : vector<64x512xf32>
    %10 = vector.broadcast %cst_7 : f32 to vector<64x512xf32>
    %11 = arith.minimumf %10, %9 : vector<64x512xf32>
    %c0_8 = arith.constant 0 : index
    %c0_9 = arith.constant 0 : index
    %12 = vector.load %arg5[%c0_8, %c0_9] : memref<128x64xbf16, #tpu.memory_space<vmem>>, vector<128x64xbf16>
    %13 = arith.truncf %11 : vector<64x512xf32> to vector<64x512xbf16>
    %cst_10 = arith.constant dense<0.000000e+00> : vector<128x512xf32>
    %14 = tpu.matmul %12, %13, %cst_10 {dimension_numbers = #tpu.dot_dimension_numbers<[1], [0], [0], [1], [0, 0, 1, 1], [], []>} : vector<128x64xbf16>, vector<64x512xbf16>, vector<128x512xf32> -> vector<128x512xf32>
    %c0_11 = arith.constant 0 : index
    %c0_12 = arith.constant 0 : index
    %15 = vector.load %arg6[%c0_11, %c0_12] : memref<128x1xf32, #tpu.memory_space<vmem>>, vector<128x1xf32>
    %16 = vector.broadcast %15 : vector<128x1xf32> to vector<128x512xf32>
    %17 = arith.addf %14, %16 : vector<128x512xf32>
    %cst_13 = arith.constant 0.000000e+00 : f32
    %cst_14 = arith.constant 6.000000e+00 : f32
    %18 = vector.broadcast %cst_13 : f32 to vector<128x512xf32>
    %19 = arith.maximumf %18, %17 : vector<128x512xf32>
    %20 = vector.broadcast %cst_14 : f32 to vector<128x512xf32>
    %21 = arith.minimumf %20, %19 : vector<128x512xf32>
    %c0_15 = arith.constant 0 : index
    %c0_16 = arith.constant 0 : index
    %22 = vector.load %arg7[%c0_15, %c0_16] : memref<8x128xbf16, #tpu.memory_space<vmem>>, vector<8x128xbf16>
    %23 = arith.truncf %21 : vector<128x512xf32> to vector<128x512xbf16>
    %cst_17 = arith.constant dense<0.000000e+00> : vector<8x512xf32>
    %24 = tpu.matmul %22, %23, %cst_17 {dimension_numbers = #tpu.dot_dimension_numbers<[1], [0], [0], [1], [0, 0, 1, 1], [], []>} : vector<8x128xbf16>, vector<128x512xbf16>, vector<8x512xf32> -> vector<8x512xf32>
    %c0_18 = arith.constant 0 : index
    %c0_19 = arith.constant 0 : index
    %25 = vector.load %arg8[%c0_18, %c0_19] : memref<8x1xf32, #tpu.memory_space<vmem>>, vector<8x1xf32>
    %26 = vector.broadcast %25 : vector<8x1xf32> to vector<8x512xf32>
    %27 = arith.addf %24, %26 : vector<8x512xf32>
    %28 = vector.extract_strided_slice %27 {offsets = [0, 0], sizes = [2, 512], strides = [1, 1]} : vector<8x512xf32> to vector<2x512xf32>
    %c0_20 = arith.constant 0 : index
    %c0_21 = arith.constant 0 : index
    %c0_22 = arith.constant 0 : index
    %29 = vector.load %arg9[%c0_20, %c0_21, %c0_22] : memref<1x2x512xf32, #tpu.memory_space<vmem>>, vector<1x2x512xf32>
    %30 = vector.shape_cast %29 : vector<1x2x512xf32> to vector<2x512xf32>
    %31 = vector.shape_cast %28 : vector<2x512xf32> to vector<1x2x512xf32>
    tpu.vector_store %arg9[%c0_20, %c0_21, %c0_22], %31 {strides = array<i32>} : memref<1x2x512xf32, #tpu.memory_space<vmem>>, vector<1x2x512xf32>,
    %32 = vector.extract_strided_slice %27 {offsets = [2, 0], sizes = [4, 512], strides = [1, 1]} : vector<8x512xf32> to vector<4x512xf32>
    %c0_23 = arith.constant 0 : index
    %c0_24 = arith.constant 0 : index
    %c0_25 = arith.constant 0 : index
    %33 = vector.load %arg10[%c0_23, %c0_24, %c0_25] : memref<1x4x512xf32, #tpu.memory_space<vmem>>, vector<1x4x512xf32>
    %34 = vector.shape_cast %33 : vector<1x4x512xf32> to vector<4x512xf32>
    %35 = vector.shape_cast %32 : vector<4x512xf32> to vector<1x4x512xf32>
    tpu.vector_store %arg10[%c0_23, %c0_24, %c0_25], %35 {strides = array<i32>} : memref<1x4x512xf32, #tpu.memory_space<vmem>>, vector<1x4x512xf32>,
    return
  }
  func.func @transform_0(%arg0: i32, %arg1: i32) -> (i32, i32, i32) {
    %c0_i32 = arith.constant 0 : i32
    %c0_i32_0 = arith.constant 0 : i32
    return %arg0, %c0_i32, %arg1 : i32, i32, i32
  }
  func.func @transform_1(%arg0: i32, %arg1: i32) -> (i32, i32) {
    %c0_i32 = arith.constant 0 : i32
    %c0_i32_0 = arith.constant 0 : i32
    %c0_i32_1 = arith.constant 0 : i32
    return %c0_i32, %c0_i32_0 : i32, i32
  }
  func.func @transform_2(%arg0: i32, %arg1: i32) -> (i32, i32) {
    %c0_i32 = arith.constant 0 : i32
    %c0_i32_0 = arith.constant 0 : i32
    %c0_i32_1 = arith.constant 0 : i32
    return %c0_i32, %c0_i32_0 : i32, i32
  }
  func.func @transform_3(%arg0: i32, %arg1: i32) -> (i32, i32) {
    %c0_i32 = arith.constant 0 : i32
    %c0_i32_0 = arith.constant 0 : i32
    %c0_i32_1 = arith.constant 0 : i32
    return %c0_i32, %c0_i32_0 : i32, i32
  }
  func.func @transform_4(%arg0: i32, %arg1: i32) -> (i32, i32) {
    %c0_i32 = arith.constant 0 : i32
    %c0_i32_0 = arith.constant 0 : i32
    %c0_i32_1 = arith.constant 0 : i32
    return %c0_i32, %c0_i32_0 : i32, i32
  }
  func.func @transform_5(%arg0: i32, %arg1: i32) -> (i32, i32) {
    %c0_i32 = arith.constant 0 : i32
    %c0_i32_0 = arith.constant 0 : i32
    %c0_i32_1 = arith.constant 0 : i32
    return %c0_i32, %c0_i32_0 : i32, i32
  }
  func.func @transform_6(%arg0: i32, %arg1: i32) -> (i32, i32) {
    %c0_i32 = arith.constant 0 : i32
    %c0_i32_0 = arith.constant 0 : i32
    %c0_i32_1 = arith.constant 0 : i32
    return %c0_i32, %c0_i32_0 : i32, i32
  }
  func.func @transform_7(%arg0: i32, %arg1: i32) -> (i32, i32, i32) {
    %c0_i32 = arith.constant 0 : i32
    %c0_i32_0 = arith.constant 0 : i32
    return %arg0, %c0_i32, %arg1 : i32, i32, i32
  }
  func.func @transform_8(%arg0: i32, %arg1: i32) -> (i32, i32, i32) {
    %c0_i32 = arith.constant 0 : i32
    %c0_i32_0 = arith.constant 0 : i32
    return %arg0, %c0_i32, %arg1 : i32, i32, i32
  }
}

</mosaic_0001>

<bundles_post_ra>
// kernel: tpu_custom_call.1
= control target key start
LH: loop header
LB: loop body
LE: loop exit
PB: predicated region body
PF: predicated region fallthrough
CT: control target
= control target key end

     0   :  { %14 = vsyncpa [#allocation3], 0  ;;  %s2213_s0 = inlined_call_operand.vmem [shape: f32[2,4,1024], index: 0, kind: input, shape index: {}]   ;;  %s2214_s1 = inlined_call_operand.vmem [shape: bf16[64,4], index: 1, kind: input, shape index: {}]   ;;  %s2215_s2 = inlined_call_operand.vmem [shape: f32[64,1], index: 2, kind: input, shape index: {}]   ;;  %s2216_s3 = inlined_call_operand.vmem [shape: bf16[128,64], index: 3, kind: input, shape index: {}]   ;;  %s2217_s4 = inlined_call_operand.vmem [shape: f32[128,1], index: 4, kind: input, shape index: {}]   ;;  %s2218_s5 = inlined_call_operand.vmem [shape: bf16[8,128], index: 5, kind: input, shape index: {}]   ;;  %s2219_s6 = inlined_call_operand.vmem [shape: f32[8,1], index: 6, kind: input, shape index: {}]   ;;  %s2220_s7 = inlined_call_operand.hbm [shape: f32[2,2,1024], index: 7, kind: output, shape index: {0}]   ;;  %s2221_s8 = inlined_call_operand.hbm [shape: f32[2,4,1024], index: 8, kind: output, shape index: {1}]  }
   0x1   :  { %16 = vsyncpa [#allocation3 + $0x1], 0 }
   0x2   :  { %17 = vsyncpa [#allocation5], 0 }
   0x3   :  { %19 = vsyncpa [#allocation5 + $0x1], 0  ;;  %s1864_s27 = smov 0   ;;  %s1866_s28 = smov 0  }
   0x4   :  { %s1868_s29 = smov 0   ;;  %s1870_s30 = smov 0  }
   0x5   :  { %s1872_s9 = smov 0   ;;  %s1874_s10 = smov 0  }
   0x6   :  { %s1876_s11 = smov 0   ;;  %s1878_s12 = smov 0  }
   0x7 LB: > { %2227 = sst [smem:[#allocation8_spill]] %s1793_s29  ;;  %s1533_s13 = sadd.s32 4294967295, %s1813_s12   ;;  %s1813_s12 = sphi %s1878_s12, %s25_s12   ;;  %s1809_s11 = sphi %s1876_s11, %s2240_s11   ;;  %s1805_s10 = sphi %s1874_s10, %s2239_s10   ;;  %s1801_s9 = sphi %s1872_s9, %s2238_s9   ;;  %s1797_s30 = sphi %s1870_s30, %s2237_s30   ;;  %s1793_s29 = sphi %s1868_s29, %s2236_s29   ;;  %s1789_s28 = sphi %s1866_s28, %s2242_s28   ;;  %s1785_s27 = sphi %s1864_s27, %s2241_s27  }
   0x8   : > { %2228 = sst [smem:[#allocation9_spill]] %s1805_s10  ;;  %s1534_s14 = sadd.s32 4294967294, %s1813_s12  }
   0x9   : > { %2229 = sst [smem:[#allocation10_spill]] %s1809_s11  ;;  %s34_s15 = sadd.s32 1, %s1805_s10 }
   0xa   : > { %p35_p0 = scmp.ge.s32.totalorder %s34_s15, 2  ;;  %s37_s16 = sadd.s32 1, %s1809_s11 }
   0xb   : > { %p210_p1 = scmp.ne.s32.totalorder %s1793_s29, %s1789_s28  ;;  %p211_p2 = scmp.eq.s32.totalorder %s1533_s13, 3 }
   0xc   : > { %s2244_s15 = smov (%p35_p0, %s34_s15), 0  ;;  %s2246_s16 = smov (!%p35_p0, %s37_s16), %s1809_s11 }
   0xd   : > { %2230 = sst [smem:[#allocation11_spill]] %s2244_s15  ;;  %s196_s17 = ssub.s32 %s1805_s10, %s2244_s15 }
   0xe   : > { %p1915_p3 = por %p211_p2, %p210_p1  ;;  %p39_p4 = scmp.ge.s32.totalorder %s2246_s16, 2 }
   0xf   : > { %p216_p5 = scmp.ne.s32.totalorder %s1789_s28, %s1785_s27  ;;  %p217_p6 = scmp.eq.s32.totalorder %s1534_s14, 3 }
  0x10   : > { %p1537_p7 = scmp.ge.s32.totalorder %s1813_s12, 1  ;;  %s2248_s16 = smov (%p39_p4, %s2246_s16), 0 }
  0x11   : > { %2232 = sst [smem:[#allocation12_spill]] %s2248_s16  ;;  %p1924_p8 = por %p217_p6, %p216_p5 }
  0x12   : > { %p294_p9 = scmp.lt.s32.totalorder %s1813_s12, 5  ;;  %s195_s20 = ssub.s32 %s1809_s11, %s2248_s16 }
  0x13   : > { %s200_s21 = sadd.s32 1, %s1793_s29  ;;  %s197_s22 = sor.u32 %s196_s17, %s195_s20 }
  0x14   : > { %p295_p10 = pnand %p1537_p7, %p294_p9  ;;  %p198_p11 = scmp.eq.s32.totalorder %s197_s22, 0 }
  0x15   : > { %s1936_s24 = sshll.u32 (!%p295_p10), %s1797_s30, 2  ;;  %p338_p12 = scmp.lt.s32.totalorder (!%p295_p10), %s1801_s9, 1  ;;  %v1815_v0 = vmov (!%p295_p10), 0   ;;  %v370_v1 = vld [vmem:[%s2215_s2] sm:$0xff] (!%p295_p10)  ;;  %v372_v2 = vld [vmem:[%s2215_s2 + $0x10] sm:$0xff] (!%p295_p10)  ;;  %v371_v3 = vld [vmem:[%s2215_s2 + $0x8] sm:$0xff] (!%p295_p10) }
  0x16   : > { %s1933_s23 = scalar_select %p198_p11, %s1793_s29, %s200_s21  }
  0x17   : > { %298 = sbr.rel (%p295_p10) target bundleno = 837 (0x345), region = 48  ;;  %p340_p13 = scmp.lt.s32.totalorder (!%p295_p10), %s1936_s24, 7  ;;  %496 = vmatprep.mubr.bf16.mxu0 (!%p295_p10), %v1815_v0  ;;  %569 = vmatprep.mubr.bf16.mxu1 (!%p295_p10), %v1815_v0  ;;  %v373_v4 = vld [vmem:[%s2215_s2 + $0x18] sm:$0xff] (!%p295_p10)  ;;  %vm451_vm0 = vcmask (!%p295_p10), 1041408   ;;  %v374_v15 = vld [vmem:[%s2215_s2 + $0x20] sm:$0xff] (!%p295_p10)  ;;  %v375_v16 = vld [vmem:[%s2215_s2 + $0x28] sm:$0xff] (!%p295_p10) }
  0x18   : > { %2234 = sst [smem:[#allocation13_spill]] %s1933_s23  ;;  %1671 = vset.pattern.permute.xlu0 (!%p295_p10), %v1815_v0  ;;  %1672 = vset.pattern.permute.xlu1 (!%p295_p10), %v1815_v0  ;;  %v1675_v17 = vld [vmem:[%s2214_s1] sm:$0xff] (!%p295_p10)   ;;  %vm438_vm1 = vcmask (!%p295_p10), 31744   ;;  %v376_v18 = vld [vmem:[%s2215_s2 + $0x30] sm:$0xff] (!%p295_p10)  ;;  %v377_v19 = vld [vmem:[%s2215_s2 + $0x38] sm:$0xff] (!%p295_p10)  ;;  %vm842_vm2 = vcmask (!%p295_p10), 523264  }
  0x19   : > { %380 = vperm.xlu0 (!%p295_p10), %1671, %v370_v1   ;;  %390 = vperm.xlu1 (!%p295_p10), %1672, %v372_v2   ;;  %v706_v20 = vld [vmem:[%s2217_s4] sm:$0xff] (!%p295_p10)  ;;  %v707_v21 = vld [vmem:[%s2217_s4 + $0x8] sm:$0xff] (!%p295_p10)  ;;  %v708_v23 = vld [vmem:[%s2217_s4 + $0x10] sm:$0xff] (!%p295_p10)  ;;  %s2116_s14 = sand.u32 (!%p295_p10), 1, %s1789_s28   ;;  %s1586_s17 = sshll.u32 (!%p295_p10), %s1801_s9, 3  ;;  %vm1367_vm3 = vcmask (!%p295_p10), 1045508  }
  0x1a   : > { %v1676_v22 = vld [vmem:[%s2214_s1 + $0x8] sm:$0xff] (!%p295_p10)   ;;  %v709_v24 = vld [vmem:[%s2217_s4 + $0x18] sm:$0xff] (!%p295_p10)  ;;  %v710_v25 = vld [vmem:[%s2217_s4 + $0x20] sm:$0xff] (!%p295_p10)  ;;  %s1539_s20 = sshll.u32 (!%p295_p10), %s2116_s14, 4  ;;  %s2122_s21 = sadd.s32 (!%p295_p10), %s1586_s17, %s1936_s24 }
  0x1b   : > { %v711_v26 = vld [vmem:[%s2217_s4 + $0x28] sm:$0xff] (!%p295_p10)  ;;  %v1677_v27 = vld [vmem:[%s2214_s1 + $0x10] sm:$0xff] (!%p295_p10)   ;;  %v713_v29 = vld [vmem:[%s2217_s4 + $0x38] sm:$0xff] (!%p295_p10)  ;;  %s336_s10 = scalar_lea.vmem (!%p295_p10), [#allocation4], %s1539_s20  ;;  %s1382_s17 = scalar_lea.sflag (!%p295_p10), [#allocation3], %s2116_s14 }
  0x1c   : > { %v712_v28 = vld [vmem:[%s2217_s4 + $0x30] sm:$0xff] (!%p295_p10)  ;;  %v714_v30 = vld [vmem:[%s2217_s4 + $0x40] sm:$0xff] (!%p295_p10)  ;;  %v715_v31 = vld [vmem:[%s2217_s4 + $0x48] sm:$0xff] (!%p295_p10)  ;;  %s1419_s11 = sshll.u32 (!%p295_p10), %s336_s10, 4  ;;  %s1817_s20 = smov (!%p295_p10), [#allocation2]   ;;  %s2139_s11 = int_to_ptr.vmem [resolvable:$true] %s1419_s11 }
  0x1d   : > { %385 = vperm.xlu0 (!%p295_p10), %1671, %v371_v3   ;;  %395 = vperm.xlu1 (!%p295_p10), %1672, %v373_v4   ;;  %v1678_v32 = vld [vmem:[%s2214_s1 + $0x18] sm:$0xff] (!%p295_p10)   ;;  %v716_v33 = vld [vmem:[%s2217_s4 + $0x50] sm:$0xff] (!%p295_p10)  ;;  %v718_v35 = vld [vmem:[%s2217_s4 + $0x60] sm:$0xff] (!%p295_p10) }
  0x1e   : > { %s339_s25 = scalar_select %p338_p12, %s1801_s9, 1  ;;  %v717_v34 = vld [vmem:[%s2217_s4 + $0x58] sm:$0xff]  ;;  %v719_v36 = vld [vmem:[%s2217_s4 + $0x68] sm:$0xff]  ;;  %v720_v37 = vld [vmem:[%s2217_s4 + $0x70] sm:$0xff] }
  0x1f   : > { %s341_s26 = scalar_select %p340_p13, %s1936_s24, 7  ;;  %v721_v38 = vld [vmem:[%s2217_s4 + $0x78] sm:$0xff]  ;;  %v1254_v39 = vld [vmem:[%s2219_s6] sm:$0xff]  ;;  %vm1368_vm4 = vmor %vm451_vm0, %vm1367_vm3 }
  0x20   : > { %s1541_s13 = sshll.u32 %s339_s25, 3  ;;  %s1587_s9 = sshll.u32 %s2122_s21, 5 }
  0x21   : > { %s343_s30 = sadd.s32 %s1541_s13, %s341_s26  ;;  %400 = vperm.xlu0 %1671, %v374_v15   ;;  %405 = vperm.xlu1 %1672, %v375_v16   ;;  %s1590_s24 = sshll.u32 %s2122_s21, 6 }
  0x22   : > { %s1542_s22 = sshll.u32 %s343_s30, 2  ;;  %s1538_s30 = sshll.u32 %s2116_s14, 3 }
  0x23   : > { %s345_s25 = scalar_lea.vmem %s2213_s0, %s1542_s22  ;;  %s329_s22 = scalar_lea.vmem [#allocation2], %s1538_s30 }
  0x24   : > { %v350_v5 = vld [vmem:[%s345_s25] sm:$0xff]  ;;  %v351_v6 = vld [vmem:[%s345_s25 + $0x8] sm:$0xff]  ;;  %s1403_s25 = sshll.u32 %s329_s22, 4  ;;  %s2130_s16 = scalar_lea.hbm %s2220_s7, %s1587_s9  ;;  %s2132_s25 = int_to_ptr.vmem [resolvable:$true] %s1403_s25 }
  0x25   : > { %v354_v7 = vcombine.high %v350_v5, %v350_v5  ;;  %v355_v8 = vcombine.high %v351_v6, %v351_v6  ;;  %v358_v9 = vpack.c.bf16 %v350_v5, %v350_v5  ;;  %v360_v10 = vpack.c.bf16 %v351_v6, %v351_v6  ;;  %410 = vperm.xlu0 %1671, %v376_v18   ;;  %s2137_s13 = scalar_lea.hbm %s2221_s8, %s1590_s24  ;;  %s1687_s30 = scalar_lea.vmem %s2132_s25, 128 }
  0x26   : > { %415 = vperm.xlu1 %1672, %v377_v19   ;;  %p1688_p0 = scmp.ne.s32.totalorder %s2132_s25, %s1687_s30  ;;  %s1691_s21 = sshll.u32 %s1817_s20, 4  ;;  %s1692_s21 = int_to_ptr.vmem [resolvable:$false] %s1691_s21 }
  0x27   : > { %v359_v11 = vpack.c.bf16 %v354_v7, %v354_v7  ;;  %v361_v12 = vpack.c.bf16 %v355_v8, %v355_v8  ;;  %v453_v13 = vsel %vm451_vm0, %v358_v9, 0  ;;  %v459_v14 = vsel %vm451_vm0, %v360_v10, 0  ;;  %s1693_s9 = scalar_lea.vmem %s1692_s21, 256  ;;  %p1694_p4 = scmp.lt.s32.totalorder %s2132_s25, %s1692_s21 }
  0x28   : > { %p1689_p1 = pnand %p1688_p0, %p1915_p3  ;;  %p1695_p5 = scmp.lt.s32.totalorder %s1693_s9, %s1687_s30 }
  0x29   : > { %1547 = vmatprep.subr.msk.bf16.mxu0 %vm451_vm0, %v359_v11  ;;  %1552 = vmatprep.subr.msk.bf16.mxu1 %vm451_vm0, %v361_v12 }
  0x2a   : > { %465 = vmatpush1.bf16.msra.mxu0 %v453_v13  ;;  %538 = vmatpush1.bf16.msra.mxu1 %v459_v14  ;;  %p1690_p2 = pneg %p1689_p1  ;;  %p1696_p6 = por %p1695_p5, %p1694_p4 }
  0x2b   : > { %724 = vperm.xlu0 %1671, %v706_v20   ;;  %729 = vperm.xlu1 %1672, %v707_v21  }
  0x2c   : > { %p1697_p7 = pnand %p1696_p6, %p1690_p2 }
  0x2d   : > { %1548 = vmatmul.mubr.msk.bf16.vlgmr.msra.gmra.mrb[0].mxu0 %vm438_vm1, %v1675_v17  ;;  %1553 = vmatmul.mubr.msk.bf16.vlgmr.msra.gmra.mrb[0].mxu1 %vm438_vm1, %v1675_v17 }
  0x2e   : > { %506 = vmatprep.mubr.bf16.mxu0 %v1815_v0  ;;  %579 = vmatprep.mubr.bf16.mxu1 %v1815_v0 }
  0x2f   : > { %734 = vperm.xlu0 %1671, %v708_v23   ;;  %739 = vperm.xlu1 %1672, %v709_v24  }
  0x33   : > { %744 = vperm.xlu0 %1671, %v710_v25   ;;  %749 = vperm.xlu1 %1672, %v711_v26  }
  0x35   : > { %1549 = vmatmul.mubr.msk.bf16.gmra.mrb[4].mxu0 %vm438_vm1, %v1676_v22  ;;  %1554 = vmatmul.mubr.msk.bf16.gmra.mrb[4].mxu1 %vm438_vm1, %v1676_v22 }
  0x36   : > { %516 = vmatprep.mubr.bf16.mxu0 %v1815_v0  ;;  %589 = vmatprep.mubr.bf16.mxu1 %v1815_v0 }
  0x37   : > { %754 = vperm.xlu0 %1671, %v712_v28   ;;  %759 = vperm.xlu1 %1672, %v713_v29  }
  0x3b   : > { %764 = vperm.xlu0 %1671, %v714_v30   ;;  %769 = vperm.xlu1 %1672, %v715_v31  }
  0x3d   : > { %1550 = vmatmul.mubr.msk.bf16.gmra.mrb[8].mxu0 %vm438_vm1, %v1677_v27  ;;  %1555 = vmatmul.mubr.msk.bf16.gmra.mrb[8].mxu1 %vm438_vm1, %v1677_v27 }
  0x3e   : > { %526 = vmatprep.mubr.bf16.mxu0 %v1815_v0  ;;  %599 = vmatprep.mubr.bf16.mxu1 %v1815_v0 }
  0x3f   : > { %774 = vperm.xlu0 %1671, %v716_v33   ;;  %779 = vperm.xlu1 %1672, %v717_v34  }
  0x43   : > { %784 = vperm.xlu0 %1671, %v718_v35   ;;  %789 = vperm.xlu1 %1672, %v719_v36  }
  0x45   : > { %1551 = vmatmul.mubr.msk.bf16.gmra.mrb[12].mxu0 %vm438_vm1, %v1678_v32  ;;  %1556 = vmatmul.mubr.msk.bf16.gmra.mrb[12].mxu1 %vm438_vm1, %v1678_v32 }
  0x46   : > { %899 = vmatprep.mubr.bf16.mxu0 %v1815_v0  ;;  %1012 = vmatprep.mubr.bf16.mxu1 %v1815_v0 }
  0x47   : > { %794 = vperm.xlu0 %1671, %v720_v37   ;;  %799 = vperm.xlu1 %1672, %v721_v38  }
  0x4b   : > { %1257 = vperm.xlu0 %1671, %v1254_v39  }
  0x98   : > { %v381_v40 = vpop.permute.xlu0 %380  ;;  %v391_v42 = vpop.permute.xlu1 %390 }
  0x9c   : > { %v386_v41 = vpop.permute.xlu0 %385  ;;  %v396_v4 = vpop.permute.xlu1 %395 }
 0x100   : > { %v498_v43 = vpop.f32.mrb[0].mxu0  ;;  %v571_v44 = vpop.f32.mrb[0].mxu1 }
 0x101   : > { %v499_v45 = vadd.f32 %v498_v43, %v381_v40  ;;  %v572_v46 = vadd.f32 %v571_v44, %v381_v40  ;;  %v500_v47 = vpop.f32.mrb[1].mxu0  ;;  %v573_v48 = vpop.f32.mrb[1].mxu1 }
 0x102   : > { %v501_v49 = vadd.f32 %v500_v47, %v381_v40  ;;  %v574_v50 = vadd.f32 %v573_v48, %v381_v40  ;;  %v502_v51 = vpop.f32.mrb[2].mxu0  ;;  %v575_v52 = vpop.f32.mrb[2].mxu1 }
 0x103   : > { %v610_v53 = vmax.f32 %v499_v45, 0.0  ;;  %v612_v54 = vmax.f32 %v572_v46, 0.0  ;;  %v503_v55 = vadd.f32 %v502_v51, %v386_v41  ;;  %v576_v56 = vadd.f32 %v575_v52, %v386_v41  ;;  %v504_v57 = vpop.f32.mrb[3].mxu0  ;;  %v577_v58 = vpop.f32.mrb[3].mxu1 }
 0x104   : > { %v611_v59 = vmax.f32 %v501_v49, 0.0  ;;  %v613_v60 = vmax.f32 %v574_v50, 0.0  ;;  %v505_v61 = vadd.f32 %v504_v57, %v386_v41  ;;  %v578_v62 = vadd.f32 %v577_v58, %v386_v41  ;;  %v401_v41 = vpop.permute.xlu0 %400 }
 0x105   : > { %v614_v63 = vmax.f32 %v503_v55, 0.0  ;;  %v616_v1 = vmax.f32 %v576_v56, 0.0  ;;  %v642_v5 = vmin.f32 %v610_v53, 6.0  ;;  %v644_v6 = vmin.f32 %v612_v54, 6.0 }
 0x106   : > { %v615_v2 = vmax.f32 %v505_v61, 0.0  ;;  %v617_v3 = vmax.f32 %v578_v62, 0.0  ;;  %v643_v9 = vmin.f32 %v611_v59, 6.0  ;;  %v645_v10 = vmin.f32 %v613_v60, 6.0 }
 0x107   : > { %v646_v7 = vmin.f32 %v614_v63, 6.0  ;;  %v648_v8 = vmin.f32 %v616_v1, 6.0 }
 0x108   : > { %v647_v11 = vmin.f32 %v615_v2, 6.0  ;;  %v649_v12 = vmin.f32 %v617_v3, 6.0  ;;  %v508_v13 = vpop.f32.mrb[4].mxu0  ;;  %v581_v14 = vpop.f32.mrb[4].mxu1 }
 0x109   : > { %v690_v15 = vpack.c.bf16 %v646_v7, %v642_v5  ;;  %v692_v16 = vpack.c.bf16 %v648_v8, %v644_v6  ;;  %v509_v17 = vadd.f32 %v508_v13, %v391_v42  ;;  %v582_v18 = vadd.f32 %v581_v14, %v391_v42  ;;  %v510_v19 = vpop.f32.mrb[5].mxu0  ;;  %v583_v20 = vpop.f32.mrb[5].mxu1 }
 0x10a   : > { %v691_v21 = vpack.c.bf16 %v647_v11, %v643_v9  ;;  %v693_v22 = vpack.c.bf16 %v649_v12, %v645_v10  ;;  %v511_v23 = vadd.f32 %v510_v19, %v391_v42  ;;  %v584_v24 = vadd.f32 %v583_v20, %v391_v42  ;;  %v512_v25 = vpop.f32.mrb[6].mxu0  ;;  %v585_v26 = vpop.f32.mrb[6].mxu1 }
 0x10b   : > { %v618_v27 = vmax.f32 %v509_v17, 0.0  ;;  %v620_v28 = vmax.f32 %v582_v18, 0.0  ;;  %v513_v29 = vadd.f32 %v512_v25, %v396_v4  ;;  %v586_v30 = vadd.f32 %v585_v26, %v396_v4  ;;  %v514_v31 = vpop.f32.mrb[7].mxu0  ;;  %v587_v32 = vpop.f32.mrb[7].mxu1 }
 0x10c   : > { %v619_v33 = vmax.f32 %v511_v23, 0.0  ;;  %v621_v34 = vmax.f32 %v584_v24, 0.0  ;;  %v515_v35 = vadd.f32 %v514_v31, %v396_v4  ;;  %v588_v36 = vadd.f32 %v587_v32, %v396_v4  ;;  %867 = vmatprep.subr.bf16.mxu0 %v691_v21  ;;  %980 = vmatprep.subr.bf16.mxu1 %v693_v22  ;;  %v406_v42 = vpop.permute.xlu1 %405 }
 0x10d   : > { %v622_v37 = vmax.f32 %v513_v29, 0.0  ;;  %v624_v38 = vmax.f32 %v586_v30, 0.0  ;;  %868 = vmatpush1.bf16.msra.mxu0 %v690_v15  ;;  %981 = vmatpush1.bf16.msra.mxu1 %v692_v16  ;;  %v650_v43 = vmin.f32 %v618_v27, 6.0  ;;  %v652_v44 = vmin.f32 %v620_v28, 6.0  ;;  %v411_v16 = vpop.permute.xlu0 %410 }
 0x10e   : > { %v623_v39 = vmax.f32 %v515_v35, 0.0  ;;  %v625_v40 = vmax.f32 %v588_v36, 0.0  ;;  %v651_v47 = vmin.f32 %v619_v33, 6.0  ;;  %v653_v48 = vmin.f32 %v621_v34, 6.0 }
 0x10f   : > { %v654_v45 = vmin.f32 %v622_v37, 6.0  ;;  %v656_v46 = vmin.f32 %v624_v38, 6.0 }
 0x110   : > { %v655_v49 = vmin.f32 %v623_v39, 6.0  ;;  %v657_v50 = vmin.f32 %v625_v40, 6.0  ;;  %v518_v51 = vpop.f32.mrb[8].mxu0  ;;  %v591_v52 = vpop.f32.mrb[8].mxu1 }
 0x111   : > { %v694_v53 = vpack.c.bf16 %v654_v45, %v650_v43  ;;  %v696_v54 = vpack.c.bf16 %v656_v46, %v652_v44  ;;  %v519_v55 = vadd.f32 %v518_v51, %v401_v41  ;;  %v592_v56 = vadd.f32 %v591_v52, %v401_v41  ;;  %v520_v57 = vpop.f32.mrb[9].mxu0  ;;  %v593_v58 = vpop.f32.mrb[9].mxu1 }
 0x112   : > { %v695_v59 = vpack.c.bf16 %v655_v49, %v651_v47  ;;  %v697_v60 = vpack.c.bf16 %v657_v50, %v653_v48  ;;  %v521_v61 = vadd.f32 %v520_v57, %v401_v41  ;;  %v594_v62 = vadd.f32 %v593_v58, %v401_v41  ;;  %v522_v63 = vpop.f32.mrb[10].mxu0  ;;  %v595_v1 = vpop.f32.mrb[10].mxu1 }
 0x113   : > { %v626_v2 = vmax.f32 %v519_v55, 0.0  ;;  %v628_v3 = vmax.f32 %v592_v56, 0.0  ;;  %v523_v4 = vadd.f32 %v522_v63, %v406_v42  ;;  %v596_v5 = vadd.f32 %v595_v1, %v406_v42  ;;  %v524_v6 = vpop.f32.mrb[11].mxu0  ;;  %v597_v7 = vpop.f32.mrb[11].mxu1 }
 0x114   : > { %v627_v8 = vmax.f32 %v521_v61, 0.0  ;;  %v629_v9 = vmax.f32 %v594_v62, 0.0  ;;  %v525_v10 = vadd.f32 %v524_v6, %v406_v42  ;;  %v598_v11 = vadd.f32 %v597_v7, %v406_v42  ;;  %869 = vmatprep.subr.bf16.mxu0 %v695_v59  ;;  %982 = vmatprep.subr.bf16.mxu1 %v697_v60  ;;  %v416_v17 = vpop.permute.xlu1 %415  ;;  %v1682_v6 = vld [vmem:[%s2216_s3 + $0x18] sm:$0xff]   ;;  %v1683_v7 = vld [vmem:[%s2216_s3 + $0x20] sm:$0xff]  }
 0x115   : > { %v630_v12 = vmax.f32 %v523_v4, 0.0  ;;  %v632_v13 = vmax.f32 %v596_v5, 0.0  ;;  %870 = vmatpush1.bf16.msra.mxu0 %v694_v53  ;;  %983 = vmatpush1.bf16.msra.mxu1 %v696_v54  ;;  %v658_v18 = vmin.f32 %v626_v2, 6.0  ;;  %v660_v19 = vmin.f32 %v628_v3, 6.0  ;;  %v1679_v3 = vld [vmem:[%s2216_s3] sm:$0xff]   ;;  %v1680_v4 = vld [vmem:[%s2216_s3 + $0x8] sm:$0xff]  }
 0x116   : > { %v631_v14 = vmax.f32 %v525_v10, 0.0  ;;  %v633_v15 = vmax.f32 %v598_v11, 0.0  ;;  %v659_v22 = vmin.f32 %v627_v8, 6.0  ;;  %v661_v23 = vmin.f32 %v629_v9, 6.0  ;;  %v1681_v5 = vld [vmem:[%s2216_s3 + $0x10] sm:$0xff]   ;;  %v1684_v8 = vld [vmem:[%s2216_s3 + $0x28] sm:$0xff]   ;;  %v725_v11 = vpop.permute.xlu0 %724 }
 0x117   : > { %v662_v20 = vmin.f32 %v630_v12, 6.0  ;;  %v664_v21 = vmin.f32 %v632_v13, 6.0  ;;  %v1685_v9 = vld [vmem:[%s2216_s3 + $0x30] sm:$0xff]   ;;  %v1686_v10 = vld [vmem:[%s2216_s3 + $0x38] sm:$0xff]  }
 0x118   : > { %v663_v24 = vmin.f32 %v631_v14, 6.0  ;;  %v665_v25 = vmin.f32 %v633_v15, 6.0  ;;  %v528_v26 = vpop.f32.mrb[12].mxu0  ;;  %v601_v27 = vpop.f32.mrb[12].mxu1 }
 0x119   : > { %v698_v28 = vpack.c.bf16 %v662_v20, %v658_v18  ;;  %v700_v29 = vpack.c.bf16 %v664_v21, %v660_v19  ;;  %v529_v30 = vadd.f32 %v528_v26, %v411_v16  ;;  %v602_v31 = vadd.f32 %v601_v27, %v411_v16  ;;  %v530_v32 = vpop.f32.mrb[13].mxu0  ;;  %v603_v33 = vpop.f32.mrb[13].mxu1 }
 0x11a   : > { %v699_v34 = vpack.c.bf16 %v663_v24, %v659_v22  ;;  %v701_v35 = vpack.c.bf16 %v665_v25, %v661_v23  ;;  %v531_v36 = vadd.f32 %v530_v32, %v411_v16  ;;  %v604_v37 = vadd.f32 %v603_v33, %v411_v16  ;;  %v532_v38 = vpop.f32.mrb[14].mxu0  ;;  %v605_v39 = vpop.f32.mrb[14].mxu1 }
 0x11b   : > { %v634_v40 = vmax.f32 %v529_v30, 0.0  ;;  %v636_v41 = vmax.f32 %v602_v31, 0.0  ;;  %v533_v42 = vadd.f32 %v532_v38, %v416_v17  ;;  %v606_v43 = vadd.f32 %v605_v39, %v416_v17  ;;  %v534_v44 = vpop.f32.mrb[15].mxu0  ;;  %v607_v45 = vpop.f32.mrb[15].mxu1 }
 0x11c   : > { %v635_v46 = vmax.f32 %v531_v36, 0.0  ;;  %v637_v47 = vmax.f32 %v604_v37, 0.0  ;;  %v535_v48 = vadd.f32 %v534_v44, %v416_v17  ;;  %v608_v49 = vadd.f32 %v607_v45, %v416_v17  ;;  %871 = vmatprep.subr.bf16.mxu0 %v699_v34  ;;  %984 = vmatprep.subr.bf16.mxu1 %v701_v35  ;;  %v730_v12 = vpop.permute.xlu1 %729  ;;  %v735_v36 = vpop.permute.xlu0 %734 }
 0x11d   : > { %v638_v50 = vmax.f32 %v533_v42, 0.0  ;;  %v640_v51 = vmax.f32 %v606_v43, 0.0  ;;  %872 = vmatpush1.bf16.msra.mxu0 %v698_v28  ;;  %985 = vmatpush1.bf16.msra.mxu1 %v700_v29  ;;  %v666_v54 = vmin.f32 %v634_v40, 6.0  ;;  %v668_v55 = vmin.f32 %v636_v41, 6.0 }
 0x11e   : > { %v639_v52 = vmax.f32 %v535_v48, 0.0  ;;  %v641_v53 = vmax.f32 %v608_v49, 0.0  ;;  %v667_v58 = vmin.f32 %v635_v46, 6.0  ;;  %v669_v59 = vmin.f32 %v637_v47, 6.0 }
 0x11f   : > { %v670_v56 = vmin.f32 %v638_v50, 6.0  ;;  %v672_v57 = vmin.f32 %v640_v51, 6.0 }
 0x120   : > { %v671_v60 = vmin.f32 %v639_v52, 6.0  ;;  %v673_v61 = vmin.f32 %v641_v53, 6.0  ;;  %v740_v37 = vpop.permute.xlu1 %739 }
 0x121   : > { %v702_v62 = vpack.c.bf16 %v670_v56, %v666_v54  ;;  %v704_v63 = vpack.c.bf16 %v672_v57, %v668_v55 }
 0x122   : > { %v703_v1 = vpack.c.bf16 %v671_v60, %v667_v58  ;;  %v705_v2 = vpack.c.bf16 %v673_v61, %v669_v59 }
 0x124   : > { %873 = vmatprep.subr.bf16.mxu0 %v703_v1  ;;  %986 = vmatprep.subr.bf16.mxu1 %v705_v2 }
 0x125   : > { %874 = vmatpush1.bf16.msra.mxu0 %v702_v62  ;;  %987 = vmatpush1.bf16.msra.mxu1 %v704_v63 }
 0x128   : > { %1565 = vmatmul.mubr.msk.bf16.vlgmr.msra.gmra.mrb[16].mxu0 %vm842_vm2, %v1679_v3  ;;  %1573 = vmatmul.mubr.msk.bf16.vlgmr.msra.gmra.mrb[16].mxu1 %vm842_vm2, %v1679_v3 }
 0x129   : > { %909 = vmatprep.mubr.bf16.mxu0 %v1815_v0  ;;  %1022 = vmatprep.mubr.bf16.mxu1 %v1815_v0 }
 0x130   : > { %1566 = vmatmul.mubr.msk.bf16.gmra.mrb[20].mxu0 %vm842_vm2, %v1680_v4  ;;  %1574 = vmatmul.mubr.msk.bf16.gmra.mrb[20].mxu1 %vm842_vm2, %v1680_v4 }
 0x131   : > { %919 = vmatprep.mubr.bf16.mxu0 %v1815_v0  ;;  %1032 = vmatprep.mubr.bf16.mxu1 %v1815_v0 }
 0x138   : > { %1567 = vmatmul.mubr.msk.bf16.gmra.mrb[24].mxu0 %vm842_vm2, %v1681_v5  ;;  %1575 = vmatmul.mubr.msk.bf16.gmra.mrb[24].mxu1 %vm842_vm2, %v1681_v5 }
 0x139   : > { %929 = vmatprep.mubr.bf16.mxu0 %v1815_v0  ;;  %1042 = vmatprep.mubr.bf16.mxu1 %v1815_v0 }
 0x140   : > { %1568 = vmatmul.mubr.msk.bf16.gmra.mrb[28].mxu0 %vm842_vm2, %v1682_v6  ;;  %1576 = vmatmul.mubr.msk.bf16.gmra.mrb[28].mxu1 %vm842_vm2, %v1682_v6 }
 0x141   : > { %939 = vmatprep.mubr.bf16.mxu0 %v1815_v0  ;;  %1052 = vmatprep.mubr.bf16.mxu1 %v1815_v0 }
 0x148   : > { %1569 = vmatmul.mubr.msk.bf16.gmra.mrb[32].mxu0 %vm842_vm2, %v1683_v7  ;;  %1577 = vmatmul.mubr.msk.bf16.gmra.mrb[32].mxu1 %vm842_vm2, %v1683_v7 }
 0x149   : > { %949 = vmatprep.mubr.bf16.mxu0 %v1815_v0  ;;  %1062 = vmatprep.mubr.bf16.mxu1 %v1815_v0 }
 0x150   : > { %1570 = vmatmul.mubr.msk.bf16.gmra.mrb[36].mxu0 %vm842_vm2, %v1684_v8  ;;  %1578 = vmatmul.mubr.msk.bf16.gmra.mrb[36].mxu1 %vm842_vm2, %v1684_v8 }
 0x151   : > { %959 = vmatprep.mubr.bf16.mxu0 %v1815_v0  ;;  %1072 = vmatprep.mubr.bf16.mxu1 %v1815_v0 }
 0x158   : > { %1571 = vmatmul.mubr.msk.bf16.gmra.mrb[40].mxu0 %vm842_vm2, %v1685_v9  ;;  %1579 = vmatmul.mubr.msk.bf16.gmra.mrb[40].mxu1 %vm842_vm2, %v1685_v9 }
 0x159   : > { %969 = vmatprep.mubr.bf16.mxu0 %v1815_v0  ;;  %1082 = vmatprep.mubr.bf16.mxu1 %v1815_v0 }
 0x160   : > { %1572 = vmatmul.mubr.msk.bf16.gmra.mrb[44].mxu0 %vm842_vm2, %v1686_v10  ;;  %1580 = vmatmul.mubr.msk.bf16.gmra.mrb[44].mxu1 %vm842_vm2, %v1686_v10 }
 0x161   : > { %1292 = vmatprep.mubr.bf16.mxu0 %v1815_v0  ;;  %1333 = vmatprep.mubr.bf16.mxu1 %v1815_v0 }
 0x1fb   : > { %v901_v13 = vpop.f32.mrb[16].mxu0  ;;  %v1014_v14 = vpop.f32.mrb[16].mxu1 }
 0x1fc   : > { %v902_v15 = vadd.f32 %v901_v13, %v725_v11  ;;  %v1015_v16 = vadd.f32 %v1014_v14, %v725_v11  ;;  %v903_v17 = vpop.f32.mrb[17].mxu0  ;;  %v1016_v18 = vpop.f32.mrb[17].mxu1 }
 0x1fd   : > { %v904_v19 = vadd.f32 %v903_v17, %v725_v11  ;;  %v1017_v20 = vadd.f32 %v1016_v18, %v725_v11  ;;  %v905_v21 = vpop.f32.mrb[18].mxu0  ;;  %v1018_v22 = vpop.f32.mrb[18].mxu1 }
 0x1fe   : > { %v1093_v23 = vmax.f32 %v902_v15, 0.0  ;;  %v1095_v24 = vmax.f32 %v1015_v16, 0.0  ;;  %v906_v25 = vadd.f32 %v905_v21, %v730_v12  ;;  %v1019_v26 = vadd.f32 %v1018_v22, %v730_v12  ;;  %v907_v27 = vpop.f32.mrb[19].mxu0  ;;  %v1020_v28 = vpop.f32.mrb[19].mxu1 }
 0x1ff   : > { %v1094_v29 = vmax.f32 %v904_v19, 0.0  ;;  %v1096_v0 = vmax.f32 %v1017_v20, 0.0  ;;  %v908_v30 = vadd.f32 %v907_v27, %v730_v12  ;;  %v1021_v31 = vadd.f32 %v1020_v28, %v730_v12  ;;  %v745_v11 = vpop.permute.xlu0 %744  ;;  %v750_v12 = vpop.permute.xlu1 %749 }
 0x200   : > { %v1097_v32 = vmax.f32 %v906_v25, 0.0  ;;  %v1099_v33 = vmax.f32 %v1019_v26, 0.0  ;;  %v1157_v38 = vmin.f32 %v1093_v23, 6.0  ;;  %v1159_v39 = vmin.f32 %v1095_v24, 6.0 }
 0x201   : > { %v1098_v34 = vmax.f32 %v908_v30, 0.0  ;;  %v1100_v35 = vmax.f32 %v1021_v31, 0.0  ;;  %v1158_v42 = vmin.f32 %v1094_v29, 6.0  ;;  %v1160_v43 = vmin.f32 %v1096_v0, 6.0 }
 0x202   : > { %v1161_v40 = vmin.f32 %v1097_v32, 6.0  ;;  %v1163_v41 = vmin.f32 %v1099_v33, 6.0 }
 0x203   : > { %v1162_v44 = vmin.f32 %v1098_v34, 6.0  ;;  %v1164_v45 = vmin.f32 %v1100_v35, 6.0  ;;  %v911_v46 = vpop.f32.mrb[20].mxu0  ;;  %v1024_v47 = vpop.f32.mrb[20].mxu1 }
 0x204   : > { %v1222_v48 = vpack.c.bf16 %v1161_v40, %v1157_v38  ;;  %v1224_v49 = vpack.c.bf16 %v1163_v41, %v1159_v39  ;;  %v912_v50 = vadd.f32 %v911_v46, %v735_v36  ;;  %v1025_v51 = vadd.f32 %v1024_v47, %v735_v36  ;;  %v913_v52 = vpop.f32.mrb[21].mxu0  ;;  %v1026_v53 = vpop.f32.mrb[21].mxu1 }
 0x205   : > { %v1223_v54 = vpack.c.bf16 %v1162_v44, %v1158_v42  ;;  %v1225_v55 = vpack.c.bf16 %v1164_v45, %v1160_v43  ;;  %v914_v56 = vadd.f32 %v913_v52, %v735_v36  ;;  %v1027_v57 = vadd.f32 %v1026_v53, %v735_v36  ;;  %v915_v58 = vpop.f32.mrb[22].mxu0  ;;  %v1028_v59 = vpop.f32.mrb[22].mxu1 }
 0x206   : > { %v1101_v60 = vmax.f32 %v912_v50, 0.0  ;;  %v1103_v61 = vmax.f32 %v1025_v51, 0.0  ;;  %v916_v62 = vadd.f32 %v915_v58, %v740_v37  ;;  %v1029_v63 = vadd.f32 %v1028_v59, %v740_v37  ;;  %v917_v1 = vpop.f32.mrb[23].mxu0  ;;  %v1030_v2 = vpop.f32.mrb[23].mxu1 }
 0x207   : > { %v1102_v3 = vmax.f32 %v914_v56, 0.0  ;;  %v1104_v4 = vmax.f32 %v1027_v57, 0.0  ;;  %v918_v5 = vadd.f32 %v917_v1, %v740_v37  ;;  %v1031_v6 = vadd.f32 %v1030_v2, %v740_v37  ;;  %1260 = vmatprep.subr.bf16.mxu0 %v1223_v54  ;;  %1301 = vmatprep.subr.bf16.mxu1 %v1225_v55 }
 0x208   : > { %v1105_v7 = vmax.f32 %v916_v62, 0.0  ;;  %v1107_v8 = vmax.f32 %v1029_v63, 0.0  ;;  %1261 = vmatpush1.bf16.msra.mxu0 %v1222_v48  ;;  %1302 = vmatpush1.bf16.msra.mxu1 %v1224_v49  ;;  %v1165_v13 = vmin.f32 %v1101_v60, 6.0  ;;  %v1167_v14 = vmin.f32 %v1103_v61, 6.0  ;;  %v755_v48 = vpop.permute.xlu0 %754  ;;  %v760_v49 = vpop.permute.xlu1 %759 }
 0x209   : > { %v1106_v9 = vmax.f32 %v918_v5, 0.0  ;;  %v1108_v10 = vmax.f32 %v1031_v6, 0.0  ;;  %v1166_v17 = vmin.f32 %v1102_v3, 6.0  ;;  %v1168_v18 = vmin.f32 %v1104_v4, 6.0 }
 0x20a   : > { %v1169_v15 = vmin.f32 %v1105_v7, 6.0  ;;  %v1171_v16 = vmin.f32 %v1107_v8, 6.0 }
 0x20b   : > { %v1170_v19 = vmin.f32 %v1106_v9, 6.0  ;;  %v1172_v20 = vmin.f32 %v1108_v10, 6.0  ;;  %v921_v21 = vpop.f32.mrb[24].mxu0  ;;  %v1034_v22 = vpop.f32.mrb[24].mxu1 }
 0x20c   : > { %v1226_v23 = vpack.c.bf16 %v1169_v15, %v1165_v13  ;;  %v1228_v24 = vpack.c.bf16 %v1171_v16, %v1167_v14  ;;  %v922_v25 = vadd.f32 %v921_v21, %v745_v11  ;;  %v1035_v26 = vadd.f32 %v1034_v22, %v745_v11  ;;  %v923_v27 = vpop.f32.mrb[25].mxu0  ;;  %v1036_v28 = vpop.f32.mrb[25].mxu1 }
 0x20d   : > { %v1227_v29 = vpack.c.bf16 %v1170_v19, %v1166_v17  ;;  %v1229_v0 = vpack.c.bf16 %v1172_v20, %v1168_v18  ;;  %v924_v30 = vadd.f32 %v923_v27, %v745_v11  ;;  %v1037_v31 = vadd.f32 %v1036_v28, %v745_v11  ;;  %v925_v32 = vpop.f32.mrb[26].mxu0  ;;  %v1038_v33 = vpop.f32.mrb[26].mxu1 }
 0x20e   : > { %v1109_v34 = vmax.f32 %v922_v25, 0.0  ;;  %v1111_v35 = vmax.f32 %v1035_v26, 0.0  ;;  %v926_v36 = vadd.f32 %v925_v32, %v750_v12  ;;  %v1039_v37 = vadd.f32 %v1038_v33, %v750_v12  ;;  %v927_v38 = vpop.f32.mrb[27].mxu0  ;;  %v1040_v39 = vpop.f32.mrb[27].mxu1 }
 0x20f   : > { %v1110_v40 = vmax.f32 %v924_v30, 0.0  ;;  %v1112_v41 = vmax.f32 %v1037_v31, 0.0  ;;  %v928_v42 = vadd.f32 %v927_v38, %v750_v12  ;;  %v1041_v43 = vadd.f32 %v1040_v39, %v750_v12  ;;  %1262 = vmatprep.subr.bf16.mxu0 %v1227_v29  ;;  %1303 = vmatprep.subr.bf16.mxu1 %v1229_v0 }
 0x210   : > { %v1113_v44 = vmax.f32 %v926_v36, 0.0  ;;  %v1115_v45 = vmax.f32 %v1039_v37, 0.0  ;;  %1263 = vmatpush1.bf16.msra.mxu0 %v1226_v23  ;;  %1304 = vmatpush1.bf16.msra.mxu1 %v1228_v24  ;;  %v1173_v50 = vmin.f32 %v1109_v34, 6.0  ;;  %v1175_v51 = vmin.f32 %v1111_v35, 6.0  ;;  %v765_v23 = vpop.permute.xlu0 %764  ;;  %v770_v24 = vpop.permute.xlu1 %769 }
 0x211   : > { %v1114_v46 = vmax.f32 %v928_v42, 0.0  ;;  %v1116_v47 = vmax.f32 %v1041_v43, 0.0  ;;  %v1174_v54 = vmin.f32 %v1110_v40, 6.0  ;;  %v1176_v55 = vmin.f32 %v1112_v41, 6.0 }
 0x212   : > { %v1177_v52 = vmin.f32 %v1113_v44, 6.0  ;;  %v1179_v53 = vmin.f32 %v1115_v45, 6.0 }
 0x213   : > { %v1178_v56 = vmin.f32 %v1114_v46, 6.0  ;;  %v1180_v57 = vmin.f32 %v1116_v47, 6.0  ;;  %v931_v58 = vpop.f32.mrb[28].mxu0  ;;  %v1044_v59 = vpop.f32.mrb[28].mxu1 }
 0x214   : > { %v1230_v60 = vpack.c.bf16 %v1177_v52, %v1173_v50  ;;  %v1232_v61 = vpack.c.bf16 %v1179_v53, %v1175_v51  ;;  %v932_v62 = vadd.f32 %v931_v58, %v755_v48  ;;  %v1045_v63 = vadd.f32 %v1044_v59, %v755_v48  ;;  %v933_v1 = vpop.f32.mrb[29].mxu0  ;;  %v1046_v2 = vpop.f32.mrb[29].mxu1 }
 0x215   : > { %v1231_v3 = vpack.c.bf16 %v1178_v56, %v1174_v54  ;;  %v1233_v4 = vpack.c.bf16 %v1180_v57, %v1176_v55  ;;  %v934_v5 = vadd.f32 %v933_v1, %v755_v48  ;;  %v1047_v6 = vadd.f32 %v1046_v2, %v755_v48  ;;  %v935_v7 = vpop.f32.mrb[30].mxu0  ;;  %v1048_v8 = vpop.f32.mrb[30].mxu1 }
 0x216   : > { %v1117_v9 = vmax.f32 %v932_v62, 0.0  ;;  %v1119_v10 = vmax.f32 %v1045_v63, 0.0  ;;  %v936_v11 = vadd.f32 %v935_v7, %v760_v49  ;;  %v1049_v12 = vadd.f32 %v1048_v8, %v760_v49  ;;  %v937_v13 = vpop.f32.mrb[31].mxu0  ;;  %v1050_v14 = vpop.f32.mrb[31].mxu1 }
 0x217   : > { %v1118_v15 = vmax.f32 %v934_v5, 0.0  ;;  %v1120_v16 = vmax.f32 %v1047_v6, 0.0  ;;  %v938_v17 = vadd.f32 %v937_v13, %v760_v49  ;;  %v1051_v18 = vadd.f32 %v1050_v14, %v760_v49  ;;  %1264 = vmatprep.subr.bf16.mxu0 %v1231_v3  ;;  %1305 = vmatprep.subr.bf16.mxu1 %v1233_v4 }
 0x218   : > { %v1121_v19 = vmax.f32 %v936_v11, 0.0  ;;  %v1123_v20 = vmax.f32 %v1049_v12, 0.0  ;;  %1265 = vmatpush1.bf16.msra.mxu0 %v1230_v60  ;;  %1306 = vmatpush1.bf16.msra.mxu1 %v1232_v61  ;;  %v1181_v25 = vmin.f32 %v1117_v9, 6.0  ;;  %v1183_v26 = vmin.f32 %v1119_v10, 6.0  ;;  %v775_v60 = vpop.permute.xlu0 %774  ;;  %v780_v61 = vpop.permute.xlu1 %779 }
 0x219   : > { %v1122_v21 = vmax.f32 %v938_v17, 0.0  ;;  %v1124_v22 = vmax.f32 %v1051_v18, 0.0  ;;  %v1182_v29 = vmin.f32 %v1118_v15, 6.0  ;;  %v1184_v0 = vmin.f32 %v1120_v16, 6.0 }
 0x21a   : > { %v1185_v27 = vmin.f32 %v1121_v19, 6.0  ;;  %v1187_v28 = vmin.f32 %v1123_v20, 6.0 }
 0x21b   : > { %v1186_v30 = vmin.f32 %v1122_v21, 6.0  ;;  %v1188_v31 = vmin.f32 %v1124_v22, 6.0  ;;  %v941_v32 = vpop.f32.mrb[32].mxu0  ;;  %v1054_v33 = vpop.f32.mrb[32].mxu1 }
 0x21c   : > { %v1234_v34 = vpack.c.bf16 %v1185_v27, %v1181_v25  ;;  %v1236_v35 = vpack.c.bf16 %v1187_v28, %v1183_v26  ;;  %v942_v36 = vadd.f32 %v941_v32, %v765_v23  ;;  %v1055_v37 = vadd.f32 %v1054_v33, %v765_v23  ;;  %v943_v38 = vpop.f32.mrb[33].mxu0  ;;  %v1056_v39 = vpop.f32.mrb[33].mxu1 }
 0x21d   : > { %v1235_v40 = vpack.c.bf16 %v1186_v30, %v1182_v29  ;;  %v1237_v41 = vpack.c.bf16 %v1188_v31, %v1184_v0  ;;  %v944_v42 = vadd.f32 %v943_v38, %v765_v23  ;;  %v1057_v43 = vadd.f32 %v1056_v39, %v765_v23  ;;  %v945_v44 = vpop.f32.mrb[34].mxu0  ;;  %v1058_v45 = vpop.f32.mrb[34].mxu1 }
 0x21e   : > { %v1125_v46 = vmax.f32 %v942_v36, 0.0  ;;  %v1127_v47 = vmax.f32 %v1055_v37, 0.0  ;;  %v946_v48 = vadd.f32 %v945_v44, %v770_v24  ;;  %v1059_v49 = vadd.f32 %v1058_v45, %v770_v24  ;;  %v947_v50 = vpop.f32.mrb[35].mxu0  ;;  %v1060_v51 = vpop.f32.mrb[35].mxu1 }
 0x21f   : > { %v1126_v52 = vmax.f32 %v944_v42, 0.0  ;;  %v1128_v53 = vmax.f32 %v1057_v43, 0.0  ;;  %v948_v54 = vadd.f32 %v947_v50, %v770_v24  ;;  %v1061_v55 = vadd.f32 %v1060_v51, %v770_v24  ;;  %1266 = vmatprep.subr.bf16.mxu0 %v1235_v40  ;;  %1307 = vmatprep.subr.bf16.mxu1 %v1237_v41 }
 0x220   : > { %v1129_v56 = vmax.f32 %v946_v48, 0.0  ;;  %v1131_v57 = vmax.f32 %v1059_v49, 0.0  ;;  %1267 = vmatpush1.bf16.msra.mxu0 %v1234_v34  ;;  %1308 = vmatpush1.bf16.msra.mxu1 %v1236_v35  ;;  %v1189_v62 = vmin.f32 %v1125_v46, 6.0  ;;  %v1191_v63 = vmin.f32 %v1127_v47, 6.0  ;;  %v785_v34 = vpop.permute.xlu0 %784  ;;  %v790_v35 = vpop.permute.xlu1 %789 }
 0x221   : > { %v1130_v58 = vmax.f32 %v948_v54, 0.0  ;;  %v1132_v59 = vmax.f32 %v1061_v55, 0.0  ;;  %v1190_v3 = vmin.f32 %v1126_v52, 6.0  ;;  %v1192_v4 = vmin.f32 %v1128_v53, 6.0 }
 0x222   : > { %v1193_v1 = vmin.f32 %v1129_v56, 6.0  ;;  %v1195_v2 = vmin.f32 %v1131_v57, 6.0 }
 0x223   : > { %v1194_v5 = vmin.f32 %v1130_v58, 6.0  ;;  %v1196_v6 = vmin.f32 %v1132_v59, 6.0  ;;  %v951_v7 = vpop.f32.mrb[36].mxu0  ;;  %v1064_v8 = vpop.f32.mrb[36].mxu1 }
 0x224   : > { %v1238_v9 = vpack.c.bf16 %v1193_v1, %v1189_v62  ;;  %v1240_v10 = vpack.c.bf16 %v1195_v2, %v1191_v63  ;;  %v952_v11 = vadd.f32 %v951_v7, %v775_v60  ;;  %v1065_v12 = vadd.f32 %v1064_v8, %v775_v60  ;;  %v953_v13 = vpop.f32.mrb[37].mxu0  ;;  %v1066_v14 = vpop.f32.mrb[37].mxu1 }
 0x225   : > { %v1239_v15 = vpack.c.bf16 %v1194_v5, %v1190_v3  ;;  %v1241_v16 = vpack.c.bf16 %v1196_v6, %v1192_v4  ;;  %v954_v17 = vadd.f32 %v953_v13, %v775_v60  ;;  %v1067_v18 = vadd.f32 %v1066_v14, %v775_v60  ;;  %v955_v19 = vpop.f32.mrb[38].mxu0  ;;  %v1068_v20 = vpop.f32.mrb[38].mxu1 }
 0x226   : > { %v1133_v21 = vmax.f32 %v952_v11, 0.0  ;;  %v1135_v22 = vmax.f32 %v1065_v12, 0.0  ;;  %v956_v23 = vadd.f32 %v955_v19, %v780_v61  ;;  %v1069_v24 = vadd.f32 %v1068_v20, %v780_v61  ;;  %v957_v25 = vpop.f32.mrb[39].mxu0  ;;  %v1070_v26 = vpop.f32.mrb[39].mxu1 }
 0x227   : > { %v1134_v27 = vmax.f32 %v954_v17, 0.0  ;;  %v1136_v28 = vmax.f32 %v1067_v18, 0.0  ;;  %v958_v29 = vadd.f32 %v957_v25, %v780_v61  ;;  %v1071_v0 = vadd.f32 %v1070_v26, %v780_v61  ;;  %1268 = vmatprep.subr.bf16.mxu0 %v1239_v15  ;;  %1309 = vmatprep.subr.bf16.mxu1 %v1241_v16 }
 0x228   : > { %v1137_v30 = vmax.f32 %v956_v23, 0.0  ;;  %v1139_v31 = vmax.f32 %v1069_v24, 0.0  ;;  %1269 = vmatpush1.bf16.msra.mxu0 %v1238_v9  ;;  %1310 = vmatpush1.bf16.msra.mxu1 %v1240_v10  ;;  %v1197_v36 = vmin.f32 %v1133_v21, 6.0  ;;  %v1199_v37 = vmin.f32 %v1135_v22, 6.0  ;;  %v795_v9 = vpop.permute.xlu0 %794  ;;  %v800_v10 = vpop.permute.xlu1 %799 }
 0x229   : > { %v1138_v32 = vmax.f32 %v958_v29, 0.0  ;;  %v1140_v33 = vmax.f32 %v1071_v0, 0.0  ;;  %v1198_v40 = vmin.f32 %v1134_v27, 6.0  ;;  %v1200_v41 = vmin.f32 %v1136_v28, 6.0 }
 0x22a   : > { %v1201_v38 = vmin.f32 %v1137_v30, 6.0  ;;  %v1203_v39 = vmin.f32 %v1139_v31, 6.0 }
 0x22b   : > { %v1202_v42 = vmin.f32 %v1138_v32, 6.0  ;;  %v1204_v43 = vmin.f32 %v1140_v33, 6.0  ;;  %v961_v44 = vpop.f32.mrb[40].mxu0  ;;  %v1074_v45 = vpop.f32.mrb[40].mxu1 }
 0x22c   : > { %v1242_v46 = vpack.c.bf16 %v1201_v38, %v1197_v36  ;;  %v1244_v47 = vpack.c.bf16 %v1203_v39, %v1199_v37  ;;  %v962_v48 = vadd.f32 %v961_v44, %v785_v34  ;;  %v1075_v49 = vadd.f32 %v1074_v45, %v785_v34  ;;  %v963_v50 = vpop.f32.mrb[41].mxu0  ;;  %v1076_v51 = vpop.f32.mrb[41].mxu1 }
 0x22d   : > { %v1243_v52 = vpack.c.bf16 %v1202_v42, %v1198_v40  ;;  %v1245_v53 = vpack.c.bf16 %v1204_v43, %v1200_v41  ;;  %v964_v54 = vadd.f32 %v963_v50, %v785_v34  ;;  %v1077_v55 = vadd.f32 %v1076_v51, %v785_v34  ;;  %v965_v56 = vpop.f32.mrb[42].mxu0  ;;  %v1078_v57 = vpop.f32.mrb[42].mxu1 }
 0x22e   : > { %v1141_v58 = vmax.f32 %v962_v48, 0.0  ;;  %v1143_v59 = vmax.f32 %v1075_v49, 0.0  ;;  %v966_v60 = vadd.f32 %v965_v56, %v790_v35  ;;  %v1079_v61 = vadd.f32 %v1078_v57, %v790_v35  ;;  %v967_v62 = vpop.f32.mrb[43].mxu0  ;;  %v1080_v63 = vpop.f32.mrb[43].mxu1 }
 0x22f   : > { %v1142_v1 = vmax.f32 %v964_v54, 0.0  ;;  %v1144_v2 = vmax.f32 %v1077_v55, 0.0  ;;  %v968_v3 = vadd.f32 %v967_v62, %v790_v35  ;;  %v1081_v4 = vadd.f32 %v1080_v63, %v790_v35  ;;  %1270 = vmatprep.subr.bf16.mxu0 %v1243_v52  ;;  %1311 = vmatprep.subr.bf16.mxu1 %v1245_v53 }
 0x230   : > { %v1145_v5 = vmax.f32 %v966_v60, 0.0  ;;  %v1147_v6 = vmax.f32 %v1079_v61, 0.0  ;;  %1271 = vmatpush1.bf16.msra.mxu0 %v1242_v46  ;;  %1312 = vmatpush1.bf16.msra.mxu1 %v1244_v47  ;;  %v1205_v11 = vmin.f32 %v1141_v58, 6.0  ;;  %v1207_v12 = vmin.f32 %v1143_v59, 6.0  ;;  %v1221_v58 = vld [vmem:[%s2218_s5] sm:$0xf] }
 0x231   : > { %v1146_v7 = vmax.f32 %v968_v3, 0.0  ;;  %v1148_v8 = vmax.f32 %v1081_v4, 0.0  ;;  %v1206_v15 = vmin.f32 %v1142_v1, 6.0  ;;  %v1208_v16 = vmin.f32 %v1144_v2, 6.0  ;;  %v1258_v1 = vpop.permute.xlu0 %1257 }
 0x232   : > { %v1209_v13 = vmin.f32 %v1145_v5, 6.0  ;;  %v1211_v14 = vmin.f32 %v1147_v6, 6.0  ;;  %v1816_v59 = vmov 1983009808   ;;  %v1351_v61 = vlaneseq }
 0x233   : > { %v1210_v17 = vmin.f32 %v1146_v7, 6.0  ;;  %v1212_v18 = vmin.f32 %v1148_v8, 6.0  ;;  %v971_v19 = vpop.f32.mrb[44].mxu0  ;;  %v1084_v20 = vpop.f32.mrb[44].mxu1  ;;  %v1349_v60 = vunpack.c.l.s4 %v1816_v59 }
 0x234   : > { %v1246_v21 = vpack.c.bf16 %v1209_v13, %v1205_v11  ;;  %v1248_v22 = vpack.c.bf16 %v1211_v14, %v1207_v12  ;;  %v972_v23 = vadd.f32 %v971_v19, %v795_v9  ;;  %v1085_v24 = vadd.f32 %v1084_v20, %v795_v9  ;;  %v973_v25 = vpop.f32.mrb[45].mxu0  ;;  %v1086_v26 = vpop.f32.mrb[45].mxu1 }
 0x235   : > { %v1247_v27 = vpack.c.bf16 %v1210_v17, %v1206_v15  ;;  %v1249_v28 = vpack.c.bf16 %v1212_v18, %v1208_v16  ;;  %v974_v29 = vadd.f32 %v973_v25, %v795_v9  ;;  %v1087_v0 = vadd.f32 %v1086_v26, %v795_v9  ;;  %v975_v30 = vpop.f32.mrb[46].mxu0  ;;  %v1088_v31 = vpop.f32.mrb[46].mxu1 }
 0x236   : > { %v1149_v32 = vmax.f32 %v972_v23, 0.0  ;;  %v1151_v33 = vmax.f32 %v1085_v24, 0.0  ;;  %v976_v34 = vadd.f32 %v975_v30, %v800_v10  ;;  %v1089_v35 = vadd.f32 %v1088_v31, %v800_v10  ;;  %v977_v36 = vpop.f32.mrb[47].mxu0  ;;  %v1090_v37 = vpop.f32.mrb[47].mxu1 }
 0x237   : > { %v1150_v38 = vmax.f32 %v974_v29, 0.0  ;;  %v1152_v39 = vmax.f32 %v1087_v0, 0.0  ;;  %v978_v40 = vadd.f32 %v977_v36, %v800_v10  ;;  %v1091_v41 = vadd.f32 %v1090_v37, %v800_v10  ;;  %1272 = vmatprep.subr.bf16.mxu0 %v1247_v27  ;;  %1313 = vmatprep.subr.bf16.mxu1 %v1249_v28 }
 0x238   : > { %v1153_v42 = vmax.f32 %v976_v34, 0.0  ;;  %v1155_v43 = vmax.f32 %v1089_v35, 0.0  ;;  %1273 = vmatpush1.bf16.msra.mxu0 %v1246_v21  ;;  %1314 = vmatpush1.bf16.msra.mxu1 %v1248_v22  ;;  %v1213_v46 = vmin.f32 %v1149_v32, 6.0  ;;  %v1215_v47 = vmin.f32 %v1151_v33, 6.0 }
 0x239   : > { %v1154_v44 = vmax.f32 %v978_v40, 0.0  ;;  %v1156_v45 = vmax.f32 %v1091_v41, 0.0  ;;  %v1214_v50 = vmin.f32 %v1150_v38, 6.0  ;;  %v1216_v51 = vmin.f32 %v1152_v39, 6.0 }
 0x23a   : > { %v1217_v48 = vmin.f32 %v1153_v42, 6.0  ;;  %v1219_v49 = vmin.f32 %v1155_v43, 6.0  ;;  %v1350_v62 = vunpack.c.0.s8 %v1349_v60  ;;  %v1352_v63 = vshrl.u32 %v1351_v61, 7 }
 0x23b   : > { %v1218_v52 = vmin.f32 %v1154_v44, 6.0  ;;  %v1220_v53 = vmin.f32 %v1156_v45, 6.0 }
 0x23c   : > { %v1250_v54 = vpack.c.bf16 %v1217_v48, %v1213_v46  ;;  %v1252_v55 = vpack.c.bf16 %v1219_v49, %v1215_v47  ;;  %v1353_v9 = vsub.s32 %v1350_v62, %v1352_v63 }
 0x23d   : > { %v1251_v56 = vpack.c.bf16 %v1218_v52, %v1214_v50  ;;  %v1253_v57 = vpack.c.bf16 %v1220_v53, %v1216_v51 }
 0x23f   : > { %1274 = vmatprep.subr.bf16.mxu0 %v1251_v56  ;;  %1315 = vmatprep.subr.bf16.mxu1 %v1253_v57 }
 0x240   : > { %1275 = vmatpush1.bf16.msra.mxu0 %v1250_v54  ;;  %1316 = vmatpush1.bf16.msra.mxu1 %v1252_v55 }
 0x243   : > { %1293 = vmatmul.mubr.bf16.vlgmr.msra.gmra.mrb[48].mxu0 %v1221_v58  ;;  %1334 = vmatmul.mubr.bf16.vlgmr.msra.gmra.mrb[48].mxu1 %v1221_v58 }
 0x316   : > { %v1294_v2 = vpop.f32.mrb[48].mxu0  ;;  %v1335_v3 = vpop.f32.mrb[48].mxu1 }
 0x317   : > { %v1295_v4 = vadd.f32 %v1294_v2, %v1258_v1  ;;  %v1336_v5 = vadd.f32 %v1335_v3, %v1258_v1  ;;  %v1296_v6 = vpop.f32.mrb[49].mxu0  ;;  %v1337_v7 = vpop.f32.mrb[49].mxu1 }
 0x318   : > { %v1297_v8 = vadd.f32 %v1296_v6, %v1258_v1  ;;  %v1338_v10 = vadd.f32 %v1337_v7, %v1258_v1  ;;  %v1298_v11 = vpop.f32.mrb[50].mxu0  ;;  %v1339_v12 = vpop.f32.mrb[50].mxu1 }
 0x319   : > { %v1299_v13 = vpop.f32.mrb[51].mxu0  ;;  %v1340_v14 = vpop.f32.mrb[51].mxu1 }
 0x31a   : > { %v1346_v15 = vcombine.low %v1295_v4, %v1297_v8  ;;  %v1365_v16 = vcombine.high %v1295_v4, %v1297_v8  ;;  %v1347_v17 = vcombine.low %v1336_v5, %v1338_v10  ;;  %v1366_v18 = vcombine.high %v1336_v5, %v1338_v10 }
 0x31c   : > { %v1354_v19 = vrot.slane %v1346_v15, %v1353_v9  ;;  %v1581_v20 = vrot.slane %v1346_v15, 10  ;;  %v1371_v21 = vrot.slane %v1365_v16, 6  ;;  %v1361_v22 = vrot.slane %v1347_v17, %v1353_v9 }
 0x31d   : > { %v1582_v23 = vrot.slane %v1347_v17, 10  ;;  %v1375_v24 = vrot.slane %v1366_v18, 6 }
 0x31e   : > { %v1362_v25 = vcombine.low %v1354_v19, %v1361_v22  ;;  %v1372_v26 = vsel %vm1368_vm4, %v1581_v20, %v1371_v21 }
 0x31f   : > { %v1376_v27 = vsel %vm1368_vm4, %v1582_v23, %v1375_v24  ;;  %1379 = vst [vmem:[%s336_s10] sm:$0xff] %v1372_v26 }
 0x320   : > { %1364 = vst [vmem:[%s329_s22] sm:$0xff] %v1362_v25  ;;  %1380 = vst [vmem:[%s336_s10 + $0x8] sm:$0xff] %v1376_v27 }
 0x321   : > { %1700 = shalt.err (!%p1697_p7)
}
 0x322   : > { %s1701_s22 = scalar_lea.hbm %s2130_s16, 128  ;;  %s1705_s29 = scalar_lea.hbm %s2220_s7, 512 }
 0x323   : > { %p1702_p9 = scmp.ne.s32.totalorder %s2130_s16, %s1701_s22  ;;  %p1706_p12 = scmp.lt.u32.totalorder %s2130_s16, %s2220_s7 }
 0x324   : > { %p1707_p13 = scmp.lt.u32.totalorder %s1705_s29, %s1701_s22  ;;  %p1709_p1 = scmp.lt.u32.totalorder %s1701_s22, %s2130_s16 }
 0x325   : > { %p1703_p10 = pnand %p1702_p9, %p1915_p3 }
 0x326   : > { %p1708_p0 = por %p1707_p13, %p1706_p12 }
 0x327   : > { %p1704_p11 = pneg %p1703_p10 }
 0x328   : > { %p1710_p2 = por %p1709_p1, %p1708_p0 }
 0x32a   : > { %p1711_p4 = pnand %p1710_p2, %p1704_p11 }
 0x32c   : > { %1714 = shalt.err (!%p1711_p4)
}
 0x32d   : > { %1593 = dma.vmem_to_hbm [thread:$0]  (%p1915_p3), %s2132_s25, 128, %s2130_s16, %s1382_s17  }
 0x32e   : > { %s1387_s26 = scalar_lea.sflag [#allocation5], %s2116_s14  ;;  %s1715_s30 = scalar_lea.vmem %s2139_s11, 256 }
 0x32f   : > { %p1716_p5 = scmp.ne.s32.totalorder %s2139_s11, %s1715_s30  ;;  %s1818_s20 = smov [#allocation4]  }
 0x330   : > { %s1719_s21 = sshll.u32 %s1818_s20, 4  ;;  %s1720_s21 = int_to_ptr.vmem [resolvable:$false] %s1719_s21 }
 0x331   : > { %p1717_p6 = pnand %p1716_p5, %p1915_p3  ;;  %s1721_s9 = scalar_lea.vmem %s1720_s21, 512 }
 0x332   : > { %p1722_p9 = scmp.lt.s32.totalorder %s2139_s11, %s1720_s21  ;;  %p1723_p10 = scmp.lt.s32.totalorder %s1721_s9, %s1715_s30 }
 0x333   : > { %p1718_p7 = pneg %p1717_p6 }
 0x334   : > { %p1724_p11 = por %p1723_p10, %p1722_p9 }
 0x336   : > { %p1725_p12 = pnand %p1724_p11, %p1718_p7 }
 0x338   : > { %1728 = shalt.err (!%p1725_p12)
}
 0x339   : > { %s1729_s14 = scalar_lea.hbm %s2137_s13, 256  ;;  %s1733_s17 = scalar_lea.hbm %s2221_s8, 1024 }
 0x33a   : > { %p1730_p13 = scmp.ne.s32.totalorder %s2137_s13, %s1729_s14  ;;  %p1734_p2 = scmp.lt.u32.totalorder %s2137_s13, %s2221_s8 }
 0x33b   : > { %p1735_p4 = scmp.lt.u32.totalorder %s1733_s17, %s1729_s14  ;;  %p1737_p6 = scmp.lt.u32.totalorder %s1729_s14, %s2137_s13 }
 0x33c   : > { %p1731_p0 = pnand %p1730_p13, %p1915_p3 }
 0x33d   : > { %p1736_p5 = por %p1735_p4, %p1734_p2 }
 0x33e   : > { %p1732_p1 = pneg %p1731_p0 }
 0x33f   : > { %p1738_p7 = por %p1737_p6, %p1736_p5 }
 0x341   : > { %p1739_p9 = pnand %p1738_p7, %p1732_p1 }
 0x343   : > { %1742 = shalt.err (!%p1739_p9)
}
 0x344   : > { %1594 = dma.vmem_to_hbm [thread:$0]  (%p1915_p3), %s2139_s11, 256, %s2137_s13, %s1387_s26  }
 0x345 PF: > { %p1604_p10 = scmp.ge.s32.totalorder %s1813_s12, 2  ;;  %s1431_s10 = sand.u32 1, %s1785_s27  }
 0x346   : > { %s1432_s29 = scalar_lea.sflag [#allocation3], %s1431_s10 }
 0x347   : > { %p1598_p11 = pnand %p1604_p10, %p1924_p8 }
 0x349   : > { %1776 = dma.done.wait (!%p1598_p11), %s1432_s29, 128  }
 0x34a   : > { %1778 = vsyncadd (!%p1598_p11), %s1432_s29, 4294967168  ;;  %s1441_s15 = scalar_lea.sflag [#allocation5], %s1431_s10 }
 0x34b   : > { %1780 = dma.done.wait (!%p1598_p11), %s1441_s15, 256  }
 0x34c   : > { %1782 = vsyncadd (!%p1598_p11), %s1441_s15, 4294967040  ;;  %s25_s12 = sadd.s32 1, %s1813_s12   ;;  %s2235_s18 = sld [smem:[#allocation8_spill]] }
 0x34d   : > { %p22_p12 = scmp.ge.s32.totalorder %s25_s12, 6   ;;  %s2236_s29 = sld [smem:[#allocation13_spill]] }
 0x34e   : > { %s2237_s30 = sld [smem:[#allocation9_spill]]  ;;  %s2238_s9 = sld [smem:[#allocation10_spill]] }
 0x34f   : > { %s2239_s10 = sld [smem:[#allocation11_spill]]  ;;  %s2240_s11 = sld [smem:[#allocation12_spill]] }
 0x350   : > { %s2241_s27 = smov %s1789_s28  ;;  %24 = sbr.rel (!%p22_p12) target bundleno = 7 (0x7), region = 100 }
 0x352   : > { %s2242_s28 = smov %s2235_s18 }
 0x357   :  { %1446 = vsyncpa [#allocation3], 1 }
 0x358   :  { %1448 = vsyncpa [#allocation3 + $0x1], 1 }
 0x359   :  { %1449 = vsyncpa [#allocation5], 1 }
 0x35a   :  { %1451 = vsyncpa [#allocation5 + $0x1], 1 }

</bundles_post_ra>
